<compile_context>
chip_gen: v6e
topology: v6e:2x2x1
jax: 0.10.0
libtpu: 0.0.40
codegen_flags: <defaults>
</compile_context>

<pallas_src>
import jax
import jax.numpy as jnp
from jax.experimental import pallas as pl
from jax.experimental.pallas import tpu as pltpu


_VMEM_BUDGET = 24 * 1024 * 1024   # conservative working-set budget (v7x-safe)


def _round_up(x, m):
    return ((x + m - 1) // m) * m


def _largest_aligned_divisor(dim_pad, cap):
    """Largest multiple of 128 that divides dim_pad and is <= cap (>=128)."""
    m = dim_pad // 128
    best = 128
    for f in range(1, m + 1):
        if m % f == 0 and f * 128 <= cap:
            best = f * 128
    return best


# --------------------------------------------------------------------------- #
# Kernel A (preferred): fused heads + context gating in one kernel.
#   grid = (D_pad // tk,)  -- pure reduction axis, f32 VMEM accumulator.
# --------------------------------------------------------------------------- #
def _fused_heads_gating_kernel(x_ref, w_ref, b_ref, wg_ref, bg_ref,
                               out_ref, acc_ref):
    k = pl.program_id(0)

    @pl.when(k == 0)
    def _():
        acc_ref[...] = jnp.zeros_like(acc_ref)

    # bf16 x bf16 -> f32 accumulation on the MXU.
    acc_ref[...] += jnp.dot(x_ref[...], w_ref[...],
                            preferred_element_type=jnp.float32)

    @pl.when(k == pl.num_programs(0) - 1)
    def _():
        s = acc_ref[...] + b_ref[...]                      # [B, C] f32
        gate = jax.nn.sigmoid(
            jnp.dot(s.astype(jnp.bfloat16), wg_ref[...],
                    preferred_element_type=jnp.float32) + bg_ref[...])
        out_ref[...] = (s * gate).astype(out_ref.dtype)


# --------------------------------------------------------------------------- #
# Kernel B (fallback when C spans multiple tiles): heads only, tiled over C, D.
# --------------------------------------------------------------------------- #
def _fused_heads_kernel(x_ref, w_ref, b_ref, s_ref, acc_ref):
    k = pl.program_id(1)                       # D-reduction step (trailing axis)

    @pl.when(k == 0)
    def _():
        acc_ref[...] = jnp.zeros_like(acc_ref)

    acc_ref[...] += jnp.dot(x_ref[...], w_ref[...],
                            preferred_element_type=jnp.float32)

    @pl.when(k == pl.num_programs(1) - 1)
    def _():
        s_ref[...] = (acc_ref[...] + b_ref[...]).astype(s_ref.dtype)


def _context_gating_kernel(s_ref, wg_ref, bg_ref, out_ref):
    s = s_ref[...]
    gate = jax.nn.sigmoid(
        jnp.dot(s.astype(jnp.bfloat16), wg_ref[...],
                preferred_element_type=jnp.float32) + bg_ref[...])
    out_ref[...] = (s * gate).astype(out_ref.dtype)


# --------------------------------------------------------------------------- #
# Parameter prep: fold the two heads, cast streamed weights to bf16, pad to
# multiples of 128 so every block is (8,128)-friendly and VMEM-bounded.
# --------------------------------------------------------------------------- #
def prepare_params(params):
    wp, bp, wi, bi, wg, bg = params
    D, C = wp.shape
    D_pad = _round_up(D, 128)
    C_pad = _round_up(C, 128)

    w_sum = (wp + wi).astype(jnp.bfloat16)                       # [D, C] bf16
    w_sum = jnp.pad(w_sum, ((0, D_pad - D), (0, C_pad - C)))
    b_sum = jnp.pad((bp + bi).astype(jnp.float32),
                    ((0, 0), (0, C_pad - C)))                    # [1, Cp] f32
    wg_p = jnp.pad(wg.astype(jnp.bfloat16),
                   ((0, C_pad - C), (0, C_pad - C)))             # [Cp, Cp] bf16
    bg_p = jnp.pad(bg.astype(jnp.float32), ((0, 0), (0, C_pad - C)))
    return (w_sum, b_sum, wg_p, bg_p, D, C)


# --------------------------------------------------------------------------- #
# Forward wrappers
# --------------------------------------------------------------------------- #
def _score_sum_fused(x, w_sum, b_sum, wg, bg, B, D_pad, C_pad):
    # Budget accounting (bytes):
    #   streamed per K step (double-buffered): 2*(tk*Cp*2 + B*tk*2) = 4*tk*(Cp+B)
    #   fixed: Wg (x2 bufs, bf16) + biases (x2, f32) + acc + out (x2, f32)
    fixed = (2 * C_pad * C_pad * 2
             + 2 * 2 * C_pad * 4
             + B * C_pad * 4
             + 2 * B * C_pad * 4)
    tk_cap = max((_VMEM_BUDGET - fixed) // (4 * (C_pad + B)), 128)
    tk = _largest_aligned_divisor(D_pad, tk_cap)
    grid = (D_pad // tk,)

    cost = pl.CostEstimate(
        flops=2 * B * D_pad * C_pad + 2 * B * C_pad * C_pad,
        transcendentals=B * C_pad,
        bytes_accessed=(D_pad * C_pad * 2 + B * D_pad * 2
                        + C_pad * C_pad * 2 + 2 * C_pad * 4 + B * C_pad * 4),
    )

    return pl.pallas_call(
        _fused_heads_gating_kernel,
        out_shape=jax.ShapeDtypeStruct((B, C_pad), jnp.float32),
        grid_spec=pltpu.PrefetchScalarGridSpec(
            num_scalar_prefetch=0,
            grid=grid,
            in_specs=[
                pl.BlockSpec((B, tk), lambda k: (0, k)),         # x   [B, tk]
                pl.BlockSpec((tk, C_pad), lambda k: (k, 0)),     # W   [tk, Cp]
                pl.BlockSpec((1, C_pad), lambda k: (0, 0)),      # b   [1, Cp]
                pl.BlockSpec((C_pad, C_pad), lambda k: (0, 0)),  # Wg  [Cp, Cp]
                pl.BlockSpec((1, C_pad), lambda k: (0, 0)),      # bg  [1, Cp]
            ],
            out_specs=pl.BlockSpec((B, C_pad), lambda k: (0, 0)),
            scratch_shapes=[pltpu.VMEM((B, C_pad), jnp.float32)],
        ),
        compiler_params=pltpu.CompilerParams(
            dimension_semantics=("arbitrary",),
            vmem_limit_bytes=32 * 1024 * 1024,
        ),
        cost_estimate=cost,
    )(x, w_sum, b_sum, wg, bg)


def _score_sum_tiled(x, w_sum, b_sum, wg, bg, B, D_pad, C_pad):
    # Fallback when Wg is too large to fuse: tile the heads over (C, D) with a
    # parallel C axis (keeps both v7x cores streaming weight), then run gating
    # once as a separate tiny kernel.
    tc = _largest_aligned_divisor(C_pad, 512)
    fixed = B * tc * 4 + 2 * B * tc * 4 + 2 * tc * 4     # acc + out + bias
    tk_cap = max((_VMEM_BUDGET - fixed) // (4 * (tc + B)), 128)
    tk = _largest_aligned_divisor(D_pad, tk_cap)
    grid = (C_pad // tc, D_pad // tk)

    s = pl.pallas_call(
        _fused_heads_kernel,
        out_shape=jax.ShapeDtypeStruct((B, C_pad), jnp.float32),
        grid_spec=pltpu.PrefetchScalarGridSpec(
            num_scalar_prefetch=0,
            grid=grid,
            in_specs=[
                pl.BlockSpec((B, tk), lambda j, k: (0, k)),
                pl.BlockSpec((tk, tc), lambda j, k: (k, j)),
                pl.BlockSpec((1, tc), lambda j, k: (0, j)),
            ],
            out_specs=pl.BlockSpec((B, tc), lambda j, k: (0, j)),
            scratch_shapes=[pltpu.VMEM((B, tc), jnp.float32)],
        ),
        compiler_params=pltpu.CompilerParams(
            dimension_semantics=("parallel", "arbitrary"),
            vmem_limit_bytes=32 * 1024 * 1024,
        ),
    )(x, w_sum, b_sum)

    # TODO(synk): tile this gating matmul over output columns if Cp*Cp*2 bytes
    # of Wg exceeds VMEM; at realistic class counts it fits comfortably.
    vmem = pl.BlockSpec(memory_space=pltpu.MemorySpace.VMEM)
    out = pl.pallas_call(
        _context_gating_kernel,
        out_shape=jax.ShapeDtypeStruct((B, C_pad), jnp.float32),
        in_specs=[vmem, vmem, vmem],
        out_specs=vmem,
    )(s, wg, bg)
    return out


def score_sum_forward(x_nchw, prepped):
    """x_nchw: [B, Cin, H, W] float32.  Returns gated fused scores [B, C] f32."""
    w_sum, b_sum, wg, bg, D, C = prepped
    B = x_nchw.shape[0]
    D_pad, C_pad = w_sum.shape

    x = x_nchw.reshape(B, -1).astype(jnp.bfloat16)
    if D_pad != D:
        x = jnp.pad(x, ((0, 0), (0, D_pad - D)))     # zero rows contribute 0

    # Fuse gating into the heads kernel whenever the (double-buffered) Wg plus
    # a minimal streamed tile fits the VMEM budget; otherwise use the tiled
    # two-kernel path.
    fused_floor = (2 * C_pad * C_pad * 2 + 4 * 128 * (C_pad + B)
                   + 3 * B * C_pad * 4 + 4 * C_pad * 4)
    if fused_floor <= _VMEM_BUDGET:
        out = _score_sum_fused(x, w_sum, b_sum, wg, bg, B, D_pad, C_pad)
    else:
        out = _score_sum_tiled(x, w_sum, b_sum, wg, bg, B, D_pad, C_pad)

    return out[:, :C] if C_pad != C else out


# --------------------------------------------------------------------------- #
# Deterministic synthetic parameters + pure-JAX reference
# --------------------------------------------------------------------------- #
def init_params(key, D, C):
    kp, ki, kg = jax.random.split(key, 3)
    scale_in = 1.0 / jnp.sqrt(jnp.float32(D))
    scale_g = 1.0 / jnp.sqrt(jnp.float32(C))
    wp = jax.random.normal(kp, (D, C), jnp.float32) * scale_in
    bp = jnp.zeros((1, C), jnp.float32)
    wi = jax.random.normal(ki, (D, C), jnp.float32) * scale_in
    bi = jnp.zeros((1, C), jnp.float32)
    wg = jax.random.normal(kg, (C, C), jnp.float32) * scale_g
    bg = jnp.zeros((1, C), jnp.float32)
    return (wp, bp, wi, bi, wg, bg)


def _reference(x_nchw, params):
    """Pure-JAX f32 reference (module semantics: two heads, then gating)."""
    B = x_nchw.shape[0]
    x = x_nchw.reshape(B, -1)
    wp, bp, wi, bi, wg, bg = params
    places = x @ wp + bp
    image = x @ wi + bi
    s = places + image
    gate = jax.nn.sigmoid(s @ wg + bg)
    return s * gate


if __name__ == "__main__":
    # Small shapes consistent with the module's forward: NCHW image input.
    B, Cin, H, W = 2, 4, 16, 16          # x: [2, 4, 16, 16]
    C = 128                              # number of output score classes
    D = Cin * H * W                      # 1024 flattened features

    key = jax.random.PRNGKey(0)
    kx, kparam = jax.random.split(key)
    x = jax.random.normal(kx, (B, Cin, H, W), jnp.float32)
    params = init_params(kparam, D, C)
    prepped = prepare_params(params)     # fold heads + bf16 weights, done once

    out = score_sum_forward(x, prepped)
    out = jax.block_until_ready(out)

    ref = _reference(x, params)
    assert out.shape == (B, C)
    # bf16 weight/activation streaming intentionally loosens tolerance slightly
    # vs. the f32 reference (all accumulation stays f32).
    assert jnp.allclose(out, ref, atol=5e-2, rtol=5e-2)

    print("KERNEL_OK")
</pallas_src>

<mosaic_0001>
module attributes {stable_mosaic.version = 11 : i64} {
  func.func @_fused_heads_gating_kernel(%arg0: i32, %arg1: memref<2x1024xbf16, #tpu.memory_space<vmem>>, %arg2: memref<1024x128xbf16, #tpu.memory_space<vmem>>, %arg3: memref<1x128xf32, #tpu.memory_space<vmem>>, %arg4: memref<128x128xbf16, #tpu.memory_space<vmem>>, %arg5: memref<1x128xf32, #tpu.memory_space<vmem>>, %arg6: memref<2x128xf32, #tpu.memory_space<vmem>>, %arg7: memref<2x128xf32, #tpu.memory_space<vmem>>) attributes {dimension_semantics = [#tpu.dimension_semantics<arbitrary>], iteration_bounds = array<i64: 1>, scalar_prefetch = 0 : i64, scratch_operands = 1 : i64, tpu.core_type = #tpu.core_type<tc>, window_params = [{transform_indices = @transform_0, window_bounds = array<i64: 2, 1024>}, {transform_indices = @transform_1, window_bounds = array<i64: 1024, 128>}, {pipeline_mode = #tpu.pipeline_mode<synchronous>, transform_indices = @transform_2, window_bounds = array<i64: 1, 128>}, {pipeline_mode = #tpu.pipeline_mode<synchronous>, transform_indices = @transform_3, window_bounds = array<i64: 128, 128>}, {pipeline_mode = #tpu.pipeline_mode<synchronous>, transform_indices = @transform_4, window_bounds = array<i64: 1, 128>}, {pipeline_mode = #tpu.pipeline_mode<synchronous>, transform_indices = @transform_5, window_bounds = array<i64: 2, 128>}]} {
    %c0_i32 = arith.constant 0 : i32
    %0 = arith.cmpi eq, %arg0, %c0_i32 : i32
    %1 = arith.extui %0 : i1 to i32
    %c0_i32_0 = arith.constant 0 : i32
    %2 = arith.cmpi ne, %1, %c0_i32_0 : i32
    scf.if %2 {
      %cst_10 = arith.constant 0.000000e+00 : f32
      %12 = vector.broadcast %cst_10 : f32 to vector<2x128xf32>
      %c0_11 = arith.constant 0 : index
      %c0_12 = arith.constant 0 : index
      %13 = vector.load %arg7[%c0_11, %c0_12] : memref<2x128xf32, #tpu.memory_space<vmem>>, vector<2x128xf32>
      tpu.vector_store %arg7[%c0_11, %c0_12], %12 {strides = array<i32>} : memref<2x128xf32, #tpu.memory_space<vmem>>, vector<2x128xf32>,
    } else {
    }
    %c0 = arith.constant 0 : index
    %c0_1 = arith.constant 0 : index
    %3 = vector.load %arg7[%c0, %c0_1] : memref<2x128xf32, #tpu.memory_space<vmem>>, vector<2x128xf32>
    %c0_2 = arith.constant 0 : index
    %c0_3 = arith.constant 0 : index
    %4 = vector.load %arg1[%c0_2, %c0_3] : memref<2x1024xbf16, #tpu.memory_space<vmem>>, vector<2x1024xbf16>
    %c0_4 = arith.constant 0 : index
    %c0_5 = arith.constant 0 : index
    %5 = vector.load %arg2[%c0_4, %c0_5] : memref<1024x128xbf16, #tpu.memory_space<vmem>>, vector<1024x128xbf16>
    %cst = arith.constant dense<0.000000e+00> : vector<2x128xf32>
    %6 = tpu.matmul %4, %5, %cst {dimension_numbers = #tpu.dot_dimension_numbers<[1], [0], [0], [1], [0, 0, 1, 1], [], []>} : vector<2x1024xbf16>, vector<1024x128xbf16>, vector<2x128xf32> -> vector<2x128xf32>
    %7 = arith.addf %3, %6 : vector<2x128xf32>
    %c0_6 = arith.constant 0 : index
    %c0_7 = arith.constant 0 : index
    %8 = vector.load %arg7[%c0_6, %c0_7] : memref<2x128xf32, #tpu.memory_space<vmem>>, vector<2x128xf32>
    tpu.vector_store %arg7[%c0_6, %c0_7], %7 {strides = array<i32>} : memref<2x128xf32, #tpu.memory_space<vmem>>, vector<2x128xf32>,
    %c0_i32_8 = arith.constant 0 : i32
    %9 = arith.cmpi eq, %arg0, %c0_i32_8 : i32
    %10 = arith.extui %9 : i1 to i32
    %c0_i32_9 = arith.constant 0 : i32
    %11 = arith.cmpi ne, %10, %c0_i32_9 : i32
    scf.if %11 {
      %c0_10 = arith.constant 0 : index
      %c0_11 = arith.constant 0 : index
      %12 = vector.load %arg7[%c0_10, %c0_11] : memref<2x128xf32, #tpu.memory_space<vmem>>, vector<2x128xf32>
      %c0_12 = arith.constant 0 : index
      %c0_13 = arith.constant 0 : index
      %13 = vector.load %arg3[%c0_12, %c0_13] : memref<1x128xf32, #tpu.memory_space<vmem>>, vector<1x128xf32>
      %14 = vector.broadcast %13 : vector<1x128xf32> to vector<2x128xf32>
      %15 = arith.addf %12, %14 : vector<2x128xf32>
      %16 = arith.truncf %15 : vector<2x128xf32> to vector<2x128xbf16>
      %c0_14 = arith.constant 0 : index
      %c0_15 = arith.constant 0 : index
      %17 = vector.load %arg4[%c0_14, %c0_15] : memref<128x128xbf16, #tpu.memory_space<vmem>>, vector<128x128xbf16>
      %cst_16 = arith.constant dense<0.000000e+00> : vector<2x128xf32>
      %18 = tpu.matmul %16, %17, %cst_16 {dimension_numbers = #tpu.dot_dimension_numbers<[1], [0], [0], [1], [0, 0, 1, 1], [], []>} : vector<2x128xbf16>, vector<128x128xbf16>, vector<2x128xf32> -> vector<2x128xf32>
      %c0_17 = arith.constant 0 : index
      %c0_18 = arith.constant 0 : index
      %19 = vector.load %arg5[%c0_17, %c0_18] : memref<1x128xf32, #tpu.memory_space<vmem>>, vector<1x128xf32>
      %20 = vector.broadcast %19 : vector<1x128xf32> to vector<2x128xf32>
      %21 = arith.addf %18, %20 : vector<2x128xf32>
      %22 = arith.negf %21 : vector<2x128xf32>
      %23 = math.exp %22 : vector<2x128xf32>
      %cst_19 = arith.constant 1.000000e+00 : f32
      %24 = vector.broadcast %cst_19 : f32 to vector<2x128xf32>
      %25 = arith.addf %24, %23 : vector<2x128xf32>
      %26 = arith.divf %24, %25 : vector<2x128xf32>
      %27 = arith.mulf %15, %26 : vector<2x128xf32>
      %c0_20 = arith.constant 0 : index
      %c0_21 = arith.constant 0 : index
      %28 = vector.load %arg6[%c0_20, %c0_21] : memref<2x128xf32, #tpu.memory_space<vmem>>, vector<2x128xf32>
      tpu.vector_store %arg6[%c0_20, %c0_21], %27 {strides = array<i32>} : memref<2x128xf32, #tpu.memory_space<vmem>>, vector<2x128xf32>,
    } else {
    }
    return
  }
  func.func @transform_0(%arg0: i32) -> (i32, i32) {
    %c0_i32 = arith.constant 0 : i32
    %c0_i32_0 = arith.constant 0 : i32
    return %c0_i32, %arg0 : i32, i32
  }
  func.func @transform_1(%arg0: i32) -> (i32, i32) {
    %c0_i32 = arith.constant 0 : i32
    %c0_i32_0 = arith.constant 0 : i32
    return %arg0, %c0_i32 : i32, i32
  }
  func.func @transform_2(%arg0: i32) -> (i32, i32) {
    %c0_i32 = arith.constant 0 : i32
    %c0_i32_0 = arith.constant 0 : i32
    %c0_i32_1 = arith.constant 0 : i32
    return %c0_i32, %c0_i32_0 : i32, i32
  }
  func.func @transform_3(%arg0: i32) -> (i32, i32) {
    %c0_i32 = arith.constant 0 : i32
    %c0_i32_0 = arith.constant 0 : i32
    %c0_i32_1 = arith.constant 0 : i32
    return %c0_i32, %c0_i32_0 : i32, i32
  }
  func.func @transform_4(%arg0: i32) -> (i32, i32) {
    %c0_i32 = arith.constant 0 : i32
    %c0_i32_0 = arith.constant 0 : i32
    %c0_i32_1 = arith.constant 0 : i32
    return %c0_i32, %c0_i32_0 : i32, i32
  }
  func.func @transform_5(%arg0: i32) -> (i32, i32) {
    %c0_i32 = arith.constant 0 : i32
    %c0_i32_0 = arith.constant 0 : i32
    %c0_i32_1 = arith.constant 0 : i32
    return %c0_i32, %c0_i32_0 : i32, i32
  }
}

</mosaic_0001>

<bundles_post_ra>
// kernel: tpu_custom_call.1
= control target key start
LH: loop header
LB: loop body
LE: loop exit
PB: predicated region body
PF: predicated region fallthrough
CT: control target
= control target key end

     0   :  { %10 = vsyncpa [#allocation4], 0  ;;  %s1382_s0 = inlined_call_operand.hbm [shape: bf16[2,1024], index: 0, kind: input, shape index: {}]   ;;  %s1383_s1 = inlined_call_operand.hbm [shape: bf16[1024,128], index: 1, kind: input, shape index: {}]   ;;  %s1384_s2 = inlined_call_operand.vmem [shape: f32[1,128], index: 2, kind: input, shape index: {}]   ;;  %s1385_s3 = inlined_call_operand.hbm [shape: bf16[128,128], index: 3, kind: input, shape index: {}]   ;;  %s1386_s4 = inlined_call_operand.vmem [shape: f32[1,128], index: 4, kind: input, shape index: {}]   ;;  %s1387_s5 = inlined_call_operand.hbm [shape: f32[2,128], index: 5, kind: output, shape index: {}]  }
   0x1   :  { %11 = vsyncpa [#allocation7], 0 }
   0x2   :  { %12 = vsyncpa [#allocation5], 0  ;;  %s1312_s18 = smov [#allocation6]  }
   0x3   :  { %s28_s19 = sshll.u32 %s1312_s18, 4  ;;  %s29_s19 = int_to_ptr.vmem [resolvable:$true] %s28_s19 }
   0x4   :  { %s1234_s20 = scalar_lea.vmem %s29_s19, 8192  ;;  %p1239_p1 = scmp.lt.s32.totalorder %s29_s19, %s29_s19 }
   0x5   :  { %p1235_p0 = scmp.ne.s32.totalorder %s29_s19, %s1234_s20  ;;  %p1240_p2 = scmp.lt.s32.totalorder %s1234_s20, %s1234_s20 }
   0x7   :  { %p1241_p3 = por %p1240_p2, %p1239_p1 }
   0x9   :  { %p1242_p4 = pnand %p1241_p3, %p1235_p0 }
   0xb   :  { %1245 = shalt.err (!%p1242_p4)
}
   0xc   :  { %s1313_s21 = smov 64   ;;  %s1314_s22 = smov 4  }
   0xd   :  { %34 = dma.hbm_to_vmem [thread:$0]  %s1383_s1, 8192, %s29_s19, [#allocation7], %s1313_s21, %s1313_s21, %s1314_s22  }
   0xe   :  { %s1315_s25 = smov [#allocation3]   ;;  %s1316_s27 = smov [#allocation8]  }
   0xf   :  { %s19_s26 = sshll.u32 %s1315_s25, 4  ;;  %s42_s28 = sshll.u32 %s1316_s27, 4  ;;  %s20_s26 = int_to_ptr.vmem [resolvable:$true] %s19_s26  ;;  %s43_s28 = int_to_ptr.vmem [resolvable:$true] %s42_s28 }
  0x10   :  { %s1254_s29 = scalar_lea.vmem %s20_s26, 128  ;;  %p1259_p6 = scmp.lt.s32.totalorder %s20_s26, %s20_s26 }
  0x11   :  { %p1255_p5 = scmp.ne.s32.totalorder %s20_s26, %s1254_s29  ;;  %p1260_p7 = scmp.lt.s32.totalorder %s1254_s29, %s1254_s29 }
  0x13   :  { %p1261_p8 = por %p1260_p7, %p1259_p6 }
  0x15   :  { %p1262_p9 = pnand %p1261_p8, %p1255_p5 }
  0x17   :  { %1265 = shalt.err (!%p1262_p9)
}
  0x18   :  { %22 = dma.hbm_to_vmem [thread:$0]  %s1382_s0, 128, %s20_s26, [#allocation4]  }
  0x19   :  { %s1274_s7 = scalar_lea.vmem %s43_s28, 1024  ;;  %p1279_p11 = scmp.lt.s32.totalorder %s43_s28, %s43_s28 }
  0x1a   :  { %p1275_p10 = scmp.ne.s32.totalorder %s43_s28, %s1274_s7  ;;  %p1280_p12 = scmp.lt.s32.totalorder %s1274_s7, %s1274_s7 }
  0x1c   :  { %p1281_p13 = por %p1280_p12, %p1279_p11 }
  0x1e   :  { %p1282_p0 = pnand %p1281_p13, %p1275_p10 }
  0x20   :  { %1285 = shalt.err (!%p1282_p0)
}
  0x21   :  { %48 = dma.hbm_to_vmem [thread:$0]  %s1385_s3, 1024, %s43_s28, [#allocation7], %s1313_s21, %s1313_s21, %s1314_s22  }
  0x22   :  { %1306 = dma.done.wait [#allocation4], 128  }
  0x23   :  { %1307 = vsyncadd [#allocation4], 4294967168 }
  0x24   :  { %1308 = dma.done.wait [#allocation7], 9216  }
  0x25   :  { %1309 = vsyncadd [#allocation7], 4294958080  ;;  %v1149_v0 = vld [vmem:[#allocation6 + $0x78] sm:$0xff]   ;;  %v1153_v4 = vld [vmem:[#allocation6 + $0x70] sm:$0xff]   ;;  %v1317_v22 = vmov 1966171168   ;;  %v201_v24 = vlaneseq }
  0x26   :  { %v1150_v1 = vld [vmem:[#allocation6 + $0xf8] sm:$0xff]   ;;  %1023 = vmatprep.subr.bf16.mxu0 %v1149_v0  ;;  %v1154_v5 = vld [vmem:[#allocation6 + $0xf0] sm:$0xff]   ;;  %v1157_v8 = vld [vmem:[#allocation6 + $0x68] sm:$0xff]   ;;  %v199_v23 = vunpack.c.l.s4 %v1317_v22  ;;  %vm1319_vm0 = vmmov 0   ;;  %s1320_s11 = smov [#allocation9]  }
  0x27   :  { %v1151_v2 = vld [vmem:[#allocation6 + $0x38] sm:$0xff]   ;;  %1045 = vmatprep.subr.bf16.mxu1 %v1150_v1  ;;  %v1155_v6 = vld [vmem:[#allocation6 + $0x30] sm:$0xff]   ;;  %v1158_v9 = vld [vmem:[#allocation6 + $0xe8] sm:$0xff]   ;;  %v202_v30 = vshrl.u32 %v201_v24, 7 }
  0x28   :  { %v1152_v3 = vld [vmem:[#allocation6 + $0xb8] sm:$0xff]   ;;  %1024 = vmatpush3.bf16.msra.mxu0 %v1151_v2  ;;  %v1156_v7 = vld [vmem:[#allocation6 + $0xb0] sm:$0xff]   ;;  %v1159_v10 = vld [vmem:[#allocation6 + $0x28] sm:$0xff]   ;;  %v200_v29 = vunpack.c.0.s8 %v199_v23 }
  0x29   :  { %1046 = vmatpush3.bf16.msra.mxu1 %v1152_v3  ;;  %1025 = vmatprep.subr.bf16.mxu0 %v1153_v4  ;;  %v1160_v11 = vld [vmem:[#allocation6 + $0xa8] sm:$0xff]   ;;  %v1161_v12 = vld [vmem:[#allocation6 + $0x60] sm:$0xff]   ;;  %v1165_v16 = vld [vmem:[#allocation6 + $0x58] sm:$0xff]  }
  0x2a   :  { %1047 = vmatprep.subr.bf16.mxu1 %v1154_v5  ;;  %v1162_v13 = vld [vmem:[#allocation6 + $0xe0] sm:$0xff]   ;;  %v1166_v17 = vld [vmem:[#allocation6 + $0xd8] sm:$0xff]   ;;  %v1169_v20 = vld [vmem:[#allocation6 + $0x50] sm:$0xff]   ;;  %v1360_v35 = vsub.s32 %v200_v29, %v202_v30 }
  0x2b   :  { %v1163_v14 = vld [vmem:[#allocation6 + $0x20] sm:$0xff]   ;;  %v1167_v18 = vld [vmem:[#allocation6 + $0x18] sm:$0xff]   ;;  %v1170_v21 = vld [vmem:[#allocation6 + $0xd0] sm:$0xff]  }
  0x2c   :  { %1026 = vmatpush3.bf16.msra.mxu0 %v1155_v6  ;;  %v1164_v15 = vld [vmem:[#allocation6 + $0xa0] sm:$0xff]   ;;  %v1168_v19 = vld [vmem:[#allocation6 + $0x98] sm:$0xff]   ;;  %v1171_v25 = vld [vmem:[#allocation6 + $0x10] sm:$0xff]  }
  0x2d   :  { %1048 = vmatpush3.bf16.msra.mxu1 %v1156_v7  ;;  %1027 = vmatprep.subr.bf16.mxu0 %v1157_v8  ;;  %v1172_v26 = vld [vmem:[#allocation6 + $0x90] sm:$0xff]   ;;  %v1173_v27 = vld [vmem:[#allocation6 + $0x48] sm:$0xff]   ;;  %v1177_v33 = vld [vmem:[#allocation6 + $0x40] sm:$0xff]  }
  0x2e   :  { %1049 = vmatprep.subr.bf16.mxu1 %v1158_v9  ;;  %v1174_v28 = vld [vmem:[#allocation6 + $0xc8] sm:$0xff]   ;;  %v1178_v34 = vld [vmem:[#allocation6 + $0xc0] sm:$0xff]   ;;  %v67_v38 = vld [vmem:[#allocation3] sm:$0xff] }
  0x2f   :  { %v1175_v31 = vld [vmem:[#allocation6 + $0x8] sm:$0xff]   ;;  %v1179_v36 = vld [vmem:[#allocation6] sm:$0xff]   ;;  %v197_v39 = vcombine.high %v67_v38, %v67_v38  ;;  %v204_v40 = vrot.slane %v67_v38, %v1360_v35  ;;  %v1182_v41 = vld [vmem:[#allocation6 + $0x178] sm:$0xff]  }
  0x30   :  { %1028 = vmatpush3.bf16.msra.mxu0 %v1159_v10  ;;  %v1176_v32 = vld [vmem:[#allocation6 + $0x88] sm:$0xff]   ;;  %v1180_v37 = vld [vmem:[#allocation6 + $0x80] sm:$0xff]   ;;  %v1183_v42 = vld [vmem:[#allocation6 + $0x1f8] sm:$0xff]  }
  0x31   :  { %1050 = vmatpush3.bf16.msra.mxu1 %v1160_v11  ;;  %1029 = vmatprep.subr.bf16.mxu0 %v1161_v12  ;;  %v212_v43 = vcombine.high %v204_v40, %v204_v40  ;;  %v220_v44 = vrot.slane %v204_v40, %v1360_v35  ;;  %v1365_v45 = vrot.slane %v197_v39, %v1360_v35  ;;  %v1184_v46 = vld [vmem:[#allocation6 + $0x138] sm:$0xff]   ;;  %v1186_v51 = vld [vmem:[#allocation6 + $0x170] sm:$0xff]   ;;  %v1190_v58 = vld [vmem:[#allocation6 + $0x168] sm:$0xff]  }
  0x32   :  { %1051 = vmatprep.subr.bf16.mxu1 %v1162_v13  ;;  %v1185_v48 = vld [vmem:[#allocation6 + $0x1b8] sm:$0xff]   ;;  %v1187_v53 = vld [vmem:[#allocation6 + $0x1f0] sm:$0xff]   ;;  %v1191_v59 = vld [vmem:[#allocation6 + $0x1e8] sm:$0xff]  }
  0x33   :  { %v234_v47 = vrot.slane %v212_v43, %v1360_v35  ;;  %v213_v49 = vcombine.high %v1365_v45, %v1365_v45  ;;  %v242_v50 = vcombine.high %v220_v44, %v220_v44  ;;  %v1188_v55 = vld [vmem:[#allocation6 + $0x130] sm:$0xff]   ;;  %v1192_v60 = vld [vmem:[#allocation6 + $0x128] sm:$0xff]   ;;  %v1194_v62 = vld [vmem:[#allocation6 + $0x160] sm:$0xff]  }
  0x34   :  { %1030 = vmatpush3.bf16.msra.mxu0 %v1163_v14  ;;  %v1189_v56 = vld [vmem:[#allocation6 + $0x1b0] sm:$0xff]   ;;  %v1193_v61 = vld [vmem:[#allocation6 + $0x1a8] sm:$0xff]   ;;  %v1195_v63 = vld [vmem:[#allocation6 + $0x1e0] sm:$0xff]  }
  0x35   :  { %1052 = vmatpush3.bf16.msra.mxu1 %v1164_v15  ;;  %1031 = vmatprep.subr.bf16.mxu0 %v1165_v16  ;;  %v244_v52 = vcombine.high %v234_v47, %v234_v47  ;;  %v241_v54 = vrot.slane %v213_v49, %v1360_v35  ;;  %v1196_v0 = vld [vmem:[#allocation6 + $0x120] sm:$0xff]   ;;  %v1198_v2 = vld [vmem:[#allocation6 + $0x158] sm:$0xff]   ;;  %v1202_v6 = vld [vmem:[#allocation6 + $0x150] sm:$0xff]  }
  0x36   :  { %1053 = vmatprep.subr.bf16.mxu1 %v1166_v17  ;;  %670 = vmatprep.mubr.bf16.mxu0 %v234_v47  ;;  %v1197_v1 = vld [vmem:[#allocation6 + $0x1a0] sm:$0xff]   ;;  %v1199_v3 = vld [vmem:[#allocation6 + $0x1d8] sm:$0xff]   ;;  %v1203_v7 = vld [vmem:[#allocation6 + $0x1d0] sm:$0xff]  }
  0x37   :  { %710 = vmatprep.mubr.bf16.mxu1 %v244_v52  ;;  %v245_v57 = vcombine.high %v241_v54, %v241_v54  ;;  %v1200_v4 = vld [vmem:[#allocation6 + $0x118] sm:$0xff]   ;;  %v1204_v8 = vld [vmem:[#allocation6 + $0x110] sm:$0xff]   ;;  %v1206_v10 = vld [vmem:[#allocation6 + $0x148] sm:$0xff]  }
  0x38   :  { %1032 = vmatpush3.bf16.msra.mxu0 %v1167_v18  ;;  %v1201_v5 = vld [vmem:[#allocation6 + $0x198] sm:$0xff]   ;;  %v1205_v9 = vld [vmem:[#allocation6 + $0x190] sm:$0xff]   ;;  %v1207_v11 = vld [vmem:[#allocation6 + $0x1c8] sm:$0xff]   ;;  %v227_v18 = vrot.slane %v1365_v45, %v1360_v35 }
  0x39   :  { %1054 = vmatpush3.bf16.msra.mxu1 %v1168_v19  ;;  %1033 = vmatprep.subr.bf16.mxu0 %v1169_v20  ;;  %v1208_v12 = vld [vmem:[#allocation6 + $0x108] sm:$0xff]   ;;  %v1210_v14 = vld [vmem:[#allocation6 + $0x140] sm:$0xff]   ;;  %v1214_v20 = vld [vmem:[#allocation8 + $0x38] sm:$0xff]  }
  0x3a   :  { %1055 = vmatprep.subr.bf16.mxu1 %v1170_v21  ;;  %v1209_v13 = vld [vmem:[#allocation6 + $0x188] sm:$0xff]   ;;  %v1211_v15 = vld [vmem:[#allocation6 + $0x1c0] sm:$0xff]   ;;  %v243_v19 = vcombine.high %v227_v18, %v227_v18  ;;  %v1318_v21 = vmov 0.0   ;;  %v1215_v22 = vld [vmem:[#allocation8 + $0x30] sm:$0xff]  }
  0x3b   :  { %v1212_v16 = vld [vmem:[#allocation6 + $0x100] sm:$0xff]   ;;  %65 = vst [vmem:[#allocation2] sm:$0x3] %v1318_v21  ;;  %v1216_v23 = vld [vmem:[#allocation8 + $0x28] sm:$0xff]  }
  0x3c   :  { %1034 = vmatpush3.bf16.msra.mxu0 %v1171_v25  ;;  %v1213_v17 = vld [vmem:[#allocation6 + $0x180] sm:$0xff]   ;;  %v1218_v25 = vld [vmem:[#allocation8 + $0x18] sm:$0xff]  }
  0x3d   :  { %1056 = vmatpush3.bf16.msra.mxu1 %v1172_v26  ;;  %1035 = vmatprep.subr.bf16.mxu0 %v1173_v27  ;;  %v1217_v24 = vld [vmem:[#allocation8 + $0x20] sm:$0xff]   ;;  %v1219_v26 = vld [vmem:[#allocation8 + $0x10] sm:$0xff]   ;;  %v1220_v27 = vld [vmem:[#allocation8 + $0x8] sm:$0xff]  }
  0x3e   :  { %1057 = vmatprep.subr.bf16.mxu1 %v1174_v28  ;;  %v1221_v28 = vld [vmem:[#allocation8] sm:$0xff]  }
  0x40   :  { %1036 = vmatpush3.bf16.msra.mxu0 %v1175_v31 }
  0x41   :  { %1058 = vmatpush3.bf16.msra.mxu1 %v1176_v32  ;;  %1037 = vmatprep.subr.bf16.mxu0 %v1177_v33 }
  0x42   :  { %1059 = vmatprep.subr.bf16.mxu1 %v1178_v34 }
  0x44   :  { %1038 = vmatpush3.bf16.msra.mxu0 %v1179_v36 }
  0x45   :  { %1060 = vmatpush3.bf16.msra.mxu1 %v1180_v37  ;;  %1067 = vmatprep.subr.bf16.mxu0 %v1182_v41 }
  0x46   :  { %1089 = vmatprep.subr.bf16.mxu1 %v1183_v42 }
  0x47   :  { %671 = vmatmul.mubr.bf16.vlgmr.msra.gmra.mxu0 %v220_v44 }
  0x48   :  { %1068 = vmatpush3.bf16.msra.mxu0 %v1184_v46  ;;  %711 = vmatmul.mubr.bf16.vlgmr.msra.gmra.mxu1 %v242_v50 }
  0x49   :  { %1069 = vmatprep.subr.bf16.mxu0 %v1186_v51  ;;  %1090 = vmatpush3.bf16.msra.mxu1 %v1185_v48  ;;  %v66_v48 = vld [vmem:[#allocation2] sm:$0x3] }
  0x4a   :  { %750 = vmatprep.mubr.bf16.mxu0 %v241_v54  ;;  %1091 = vmatprep.subr.bf16.mxu1 %v1187_v53  ;;  %v1012_v54 = vld [vmem:[%s1384_s2] ss:$0 sm:$0xff]  ;;  %s938_s2 = sshll.u32 %s1320_s11, 4  ;;  %s939_s2 = int_to_ptr.vmem [resolvable:$true] %s938_s2 }
  0x4b   :  { %790 = vmatprep.mubr.bf16.mxu1 %v245_v57  ;;  %s1286_s12 = scalar_lea.vmem %s939_s2, 32  ;;  %p1291_p2 = scmp.lt.s32.totalorder %s939_s2, %s939_s2 }
  0x4c   :  { %1070 = vmatpush3.bf16.msra.mxu0 %v1188_v55  ;;  %p1287_p1 = scmp.ne.s32.totalorder %s939_s2, %s1286_s12  ;;  %p1292_p3 = scmp.lt.s32.totalorder %s1286_s12, %s1286_s12 }
  0x4d   :  { %1071 = vmatprep.subr.bf16.mxu0 %v1190_v58  ;;  %1092 = vmatpush3.bf16.msra.mxu1 %v1189_v56  ;;  %v1013_v58 = vld [vmem:[%s1386_s4] ss:$0 sm:$0xff] }
  0x4e   :  { %1093 = vmatprep.subr.bf16.mxu1 %v1191_v59  ;;  %p1293_p4 = por %p1292_p3, %p1291_p2 }
  0x50   :  { %1072 = vmatpush3.bf16.msra.mxu0 %v1192_v60  ;;  %p1294_p5 = pnand %p1293_p4, %p1287_p1 }
  0x51   :  { %1073 = vmatprep.subr.bf16.mxu0 %v1194_v62  ;;  %1094 = vmatpush3.bf16.msra.mxu1 %v1193_v61 }
  0x52   :  { %1095 = vmatprep.subr.bf16.mxu1 %v1195_v63 }
  0x54   :  { %1074 = vmatpush3.bf16.msra.mxu0 %v1196_v0 }
  0x55   :  { %1075 = vmatprep.subr.bf16.mxu0 %v1198_v2  ;;  %1096 = vmatpush3.bf16.msra.mxu1 %v1197_v1 }
  0x56   :  { %1097 = vmatprep.subr.bf16.mxu1 %v1199_v3 }
  0x58   :  { %1076 = vmatpush3.bf16.msra.mxu0 %v1200_v4 }
  0x59   :  { %1077 = vmatprep.subr.bf16.mxu0 %v1202_v6  ;;  %1098 = vmatpush3.bf16.msra.mxu1 %v1201_v5 }
  0x5a   :  { %1099 = vmatprep.subr.bf16.mxu1 %v1203_v7 }
  0x5c   :  { %1078 = vmatpush3.bf16.msra.mxu0 %v1204_v8 }
  0x5d   :  { %1079 = vmatprep.subr.bf16.mxu0 %v1206_v10  ;;  %1100 = vmatpush3.bf16.msra.mxu1 %v1205_v9 }
  0x5e   :  { %1101 = vmatprep.subr.bf16.mxu1 %v1207_v11 }
  0x60   :  { %1080 = vmatpush3.bf16.msra.mxu0 %v1208_v12 }
  0x61   :  { %1081 = vmatprep.subr.bf16.mxu0 %v1210_v14  ;;  %1102 = vmatpush3.bf16.msra.mxu1 %v1209_v13 }
  0x62   :  { %1103 = vmatprep.subr.bf16.mxu1 %v1211_v15 }
  0x64   :  { %1082 = vmatpush3.bf16.msra.mxu0 %v1212_v16 }
  0x65   :  { %1104 = vmatpush3.bf16.msra.mxu1 %v1213_v17  ;;  %1120 = vmatprep.subr.bf16.mxu0 %v1318_v21 }
  0x67   :  { %751 = vmatmul.mubr.bf16.vlgmr.msra.gmra.mxu0 %v227_v18 }
  0x68   :  { %791 = vmatmul.mubr.bf16.vlgmr.msra.gmra.mxu1 %v243_v19  ;;  %1121 = vmatpush3.bf16.msra.mxu0 %v1214_v20 }
  0x69   :  { %1122 = vmatprep.subr.bf16.mxu0 %v1318_v21  ;;  %1136 = vmatprep.mubr.msk.bf16.mxu0 %vm1319_vm0, %v1318_v21 }
  0x6c   :  { %1123 = vmatpush3.bf16.msra.mxu0 %v1215_v22 }
  0x6d   :  { %1124 = vmatprep.subr.bf16.mxu0 %v1318_v21 }
  0x70   :  { %1125 = vmatpush3.bf16.msra.mxu0 %v1216_v23 }
  0x71   :  { %1126 = vmatprep.subr.bf16.mxu0 %v1318_v21 }
  0x74   :  { %1127 = vmatpush3.bf16.msra.mxu0 %v1217_v24 }
  0x75   :  { %1128 = vmatprep.subr.bf16.mxu0 %v1318_v21 }
  0x78   :  { %1129 = vmatpush3.bf16.msra.mxu0 %v1218_v25 }
  0x79   :  { %1130 = vmatprep.subr.bf16.mxu0 %v1318_v21 }
  0x7c   :  { %1131 = vmatpush3.bf16.msra.mxu0 %v1219_v26 }
  0x7d   :  { %1132 = vmatprep.subr.bf16.mxu0 %v1318_v21 }
  0x80   :  { %1133 = vmatpush3.bf16.msra.mxu0 %v1220_v27 }
  0x81   :  { %1134 = vmatprep.subr.bf16.mxu0 %v1318_v21 }
  0x84   :  { %1135 = vmatpush3.bf16.msra.mxu0 %v1221_v28 }
 0x107   :  { %v1039_v29 = vpop.f32.mrf.mxu0 }
 0x108   :  { %v1061_v30 = vpop.f32.mrf.mxu1 }
 0x109   :  { %v1040_v31 = vpop.f32.mrf.mxu0 }
 0x10a   :  { %v1062_v32 = vpop.f32.mrf.mxu1  ;;  %v1041_v37 = vadd.f32 %v1040_v31, %v1039_v29 }
 0x10b   :  { %v1042_v33 = vpop.f32.mrf.mxu0  ;;  %v1063_v38 = vadd.f32 %v1062_v32, %v1061_v30 }
 0x10c   :  { %v1064_v34 = vpop.f32.mrf.mxu1 }
 0x10d   :  { %v1043_v35 = vpop.f32.mrf.mxu0  ;;  %v713_v42 = vadd.f32 %v1063_v38, %v1041_v37 }
 0x10e   :  { %v1065_v36 = vpop.f32.mrf.mxu1 }
 0x127   :  { %v1083_v39 = vpop.f32.mrf.mxu0 }
 0x128   :  { %v1105_v40 = vpop.f32.mrf.mxu1 }
 0x129   :  { %v1084_v41 = vpop.f32.mrf.mxu0 }
 0x12a   :  { %v1085_v43 = vadd.f32 %v1084_v41, %v1083_v39  ;;  %v1106_v44 = vpop.f32.mrf.mxu1 }
 0x12b   :  { %v1086_v45 = vpop.f32.mrf.mxu0  ;;  %v1107_v47 = vadd.f32 %v1106_v44, %v1105_v40 }
 0x12c   :  { %v753_v46 = vadd.f32 %v1085_v43, %v713_v42  ;;  %v1108_v49 = vpop.f32.mrf.mxu1 }
 0x12d   :  { %v1087_v50 = vpop.f32.mrf.mxu0 }
 0x12e   :  { %v793_v51 = vadd.f32 %v1107_v47, %v753_v46  ;;  %v1109_v52 = vpop.f32.mrf.mxu1 }
 0x130   :  { %v798_v53 = vadd.f32 %v793_v51, %v66_v48 }
 0x132   :  { %799 = vst [vmem:[#allocation2] sm:$0x3] %v798_v53 }
 0x139   :  { %v803_v55 = vld [vmem:[#allocation2] sm:$0x3] }
 0x13a   :  { %v811_v56 = vadd.f32 %v1012_v54, %v803_v55 }
 0x13c   :  { %v812_v57 = vpack.c.bf16 %v811_v56, %v811_v56 }
 0x13e   :  { %1137 = vmatmul.mubr.bf16.vlgmr.msra.gmra.mxu0 %v812_v57 }
 0x1fe   :  { %v918_v59 = vpop.f32.mrf.mxu0 }
 0x1ff   :  { %v919_v60 = vadd.f32 %v1013_v58, %v918_v59 }
 0x200   :  { %v1138_v61 = vpop.f32.mrf.mxu0 }
 0x201   :  { %v1022_v62 = vmul.f32 -1.442695, %v919_v60 }
 0x202   :  { %v921_v63 = vpop.f32.mrf.mxu0 }
 0x203   :  { %1222 = vpow2.f32 %v1022_v62 }
 0x204   :  { %v1139_v0 = vpop.f32.mrf.mxu0 }
 0x210   :  { %v1223_v1 = vpop.eup %1222 }
 0x211   :  { %v927_v2 = vadd.f32 1.0, %v1223_v1 }
 0x213   :  { %1224 = vrcp.f32 %v927_v2 }
 0x220   :  { %v1225_v3 = vpop.eup %1224 }
 0x221   :  { %v930_v4 = vmul.f32 %v1225_v3, %v811_v56 }
 0x223   :  { %931 = vst [vmem:[#allocation9] sm:$0x3] %v930_v4 }
 0x224   :  { %1297 = shalt.err (!%p1294_p5)
}
 0x225   :  { %941 = dma.vmem_to_hbm [thread:$0]  %s939_s2, 32, %s1387_s5, [#allocation5]  }
 0x226   :  { %1310 = dma.done.wait [#allocation5], 32  }
 0x227   :  { %1311 = vsyncadd [#allocation5], 4294967264 }
 0x228   :  { %945 = vsyncpa [#allocation4], 1 }
 0x229   :  { %946 = vsyncpa [#allocation7], 1 }
 0x22a   :  { %947 = vsyncpa [#allocation5], 1 }

</bundles_post_ra>
